<compile_context>
chip_gen: v5e
topology: v5e:2x2
jax: 0.10.0
libtpu: 0.0.40
codegen_flags: <defaults>
</compile_context>

<pallas_src>
import functools

import jax
import jax.numpy as jnp
from jax.experimental import pallas as pl
from jax.experimental.pallas import tpu as pltpu

BN_EPS = 1e-5
LANE = 128
SUBLANE = 8
VMEM_LIMIT = 32 * 1024 * 1024


def _round_up(x, m):
    return (x + m - 1) // m * m


# --------------------------------------------------------------------------
# Kernels
# --------------------------------------------------------------------------
def _mlp_body(xn, w1_ref, b1_ref, w2_ref, b2_ref, w3_ref, b3_ref, o_ref):
    """Shared MLP tail: fc1+relu, fc2+relu, fc3+tanh (bf16 MXU, f32 accum)."""
    h1 = jnp.dot(xn.astype(jnp.bfloat16), w1_ref[...],
                 preferred_element_type=jnp.float32) + b1_ref[...]
    h1 = jnp.maximum(h1, 0.0)
    h2 = jnp.dot(h1.astype(jnp.bfloat16), w2_ref[...],
                 preferred_element_type=jnp.float32) + b2_ref[...]
    h2 = jnp.maximum(h2, 0.0)
    out = jnp.dot(h2.astype(jnp.bfloat16), w3_ref[...],
                  preferred_element_type=jnp.float32) + b3_ref[...]
    o_ref[...] = jnp.tanh(out).astype(o_ref.dtype)


def _actor_fused_kernel(x_ref, w1_ref, b1_ref, w2_ref, b2_ref, w3_ref, b3_ref,
                        o_ref, *, inv_n):
    """Single-tile path: BN stats + normalize + MLP, everything VMEM-resident.

    Padded batch rows are zero and therefore contribute nothing to the
    sum / sum-of-squares; inv_n = 1 / true_batch_size is baked at trace time.
    """
    x = x_ref[...].astype(jnp.float32)                       # (Bp, S)
    s = jnp.sum(x, axis=0, keepdims=True)
    ss = jnp.sum(x * x, axis=0, keepdims=True)
    mean = s * inv_n
    var = jnp.maximum(ss * inv_n - mean * mean, 0.0)         # biased variance
    xn = (x - mean) * jax.lax.rsqrt(var + BN_EPS)            # gamma/beta folded into w1/b1
    _mlp_body(xn, w1_ref, b1_ref, w2_ref, b2_ref, w3_ref, b3_ref, o_ref)


def _bn_stats_kernel(x_ref, stats_ref):
    """Pass 1: accumulate per-feature sum and sum-of-squares over batch tiles."""
    i = pl.program_id(0)

    @pl.when(i == 0)
    def _():
        stats_ref[...] = jnp.zeros_like(stats_ref)

    x = x_ref[...].astype(jnp.float32)
    s = jnp.sum(x, axis=0, keepdims=True)
    ss = jnp.sum(x * x, axis=0, keepdims=True)
    stats_ref[...] += jnp.concatenate([s, ss], axis=0)       # (2, S)


def _actor_mlp_kernel(x_ref, stats_ref, w1_ref, b1_ref, w2_ref, b2_ref,
                      w3_ref, b3_ref, o_ref, *, inv_n):
    """Pass 2: normalize a batch tile with the global stats, then the MLP."""
    x = x_ref[...].astype(jnp.float32)
    stats = stats_ref[...]
    mean = stats[0:1, :] * inv_n
    var = jnp.maximum(stats[1:2, :] * inv_n - mean * mean, 0.0)
    xn = (x - mean) * jax.lax.rsqrt(var + BN_EPS)
    _mlp_body(xn, w1_ref, b1_ref, w2_ref, b2_ref, w3_ref, b3_ref, o_ref)


# --------------------------------------------------------------------------
# Wrapper
# --------------------------------------------------------------------------
def _prepare_params(params):
    """Fold BN affine into fc1, lane-pad fc3, cast weights to bf16."""
    gamma = params["gamma"].astype(jnp.float32)              # (1, S)
    beta = params["beta"].astype(jnp.float32)                # (1, S)
    w1 = params["w1"].astype(jnp.float32)                    # (S, fc1)
    b1 = params["b1"].astype(jnp.float32)                    # (1, fc1)

    # (gamma*xhat + beta) @ w1 + b1 == xhat @ (gamma.T * w1) + (beta @ w1 + b1)
    w1_f = gamma.reshape(-1, 1) * w1
    b1_f = beta @ w1 + b1

    fc2, action_size = params["w3"].shape
    n_pad = _round_up(max(action_size, LANE), LANE)
    w3_p = jnp.zeros((fc2, n_pad), jnp.float32).at[:, :action_size].set(
        params["w3"].astype(jnp.float32))
    b3_p = jnp.zeros((1, n_pad), jnp.float32).at[:, :action_size].set(
        params["b3"].astype(jnp.float32))

    return (w1_f.astype(jnp.bfloat16), b1_f,
            params["w2"].astype(jnp.bfloat16), params["b2"].astype(jnp.float32),
            w3_p.astype(jnp.bfloat16), b3_p)


def actor_forward(state, params, *, tile_b=256):
    """state: (B, S) float32.  params: gamma/beta/w1/b1/w2/b2/w3/b3."""
    B, S = state.shape
    fc1 = params["w1"].shape[1]
    fc2, action_size = params["w3"].shape

    w1, b1, w2, b2, w3, b3 = _prepare_params(params)
    n_pad = w3.shape[1]
    weight_args = (w1, b1, w2, b2, w3, b3)

    # Pad batch rows to a sublane / tile multiple (zero rows are stats-neutral).
    if B <= tile_b:
        b_pad, num_tiles = _round_up(B, SUBLANE), 1
    else:
        b_pad = _round_up(B, tile_b)
        num_tiles = b_pad // tile_b

    x = state.astype(jnp.float32)
    if b_pad != B:
        x = jnp.pad(x, ((0, b_pad - B), (0, 0)))

    inv_n = 1.0 / float(B)
    vmem = pl.BlockSpec(memory_space=pltpu.MemorySpace.VMEM)

    if num_tiles == 1:
        out = pl.pallas_call(
            functools.partial(_actor_fused_kernel, inv_n=inv_n),
            out_shape=jax.ShapeDtypeStruct((b_pad, n_pad), jnp.float32),
            in_specs=[vmem] * (1 + len(weight_args)),
            out_specs=vmem,
            compiler_params=pltpu.CompilerParams(vmem_limit_bytes=VMEM_LIMIT),
        )(x, *weight_args)
    else:
        # Pass 1: batch-tiled BN statistics reduction (accumulator output).
        stats = pl.pallas_call(
            _bn_stats_kernel,
            out_shape=jax.ShapeDtypeStruct((2, S), jnp.float32),
            grid=(num_tiles,),
            in_specs=[pl.BlockSpec((tile_b, S), lambda i: (i, 0))],
            out_specs=pl.BlockSpec((2, S), lambda i: (0, 0)),
            compiler_params=pltpu.CompilerParams(
                dimension_semantics=("arbitrary",),
                vmem_limit_bytes=VMEM_LIMIT),
        )(x)

        const = lambda i: (0, 0)   # weights/stats resident across grid steps
        out = pl.pallas_call(
            functools.partial(_actor_mlp_kernel, inv_n=inv_n),
            out_shape=jax.ShapeDtypeStruct((b_pad, n_pad), jnp.float32),
            grid=(num_tiles,),
            in_specs=[
                pl.BlockSpec((tile_b, S), lambda i: (i, 0)),   # x tiles
                pl.BlockSpec((2, S), const),                   # BN stats
                pl.BlockSpec((S, fc1), const),
                pl.BlockSpec((1, fc1), const),
                pl.BlockSpec((fc1, fc2), const),
                pl.BlockSpec((1, fc2), const),
                pl.BlockSpec((fc2, n_pad), const),
                pl.BlockSpec((1, n_pad), const),
            ],
            out_specs=pl.BlockSpec((tile_b, n_pad), lambda i: (i, 0)),
            compiler_params=pltpu.CompilerParams(
                dimension_semantics=("parallel",),
                vmem_limit_bytes=VMEM_LIMIT),
        )(x, stats, *weight_args)

    return out[:B, :action_size]


# --------------------------------------------------------------------------
# Params / reference
# --------------------------------------------------------------------------
def init_actor_params(key, state_size, action_size, fc1=256, fc2=128):
    """Deterministic init mirroring the PyTorch module's reset_parameters()."""
    k1, k2, k3, kb1, kb2, kb3 = jax.random.split(key, 6)

    def kaiming_normal(k, fan_in, fan_out):
        std = jnp.sqrt(2.0 / fan_in)
        return jax.random.normal(k, (fan_in, fan_out), jnp.float32) * std

    def linear_bias(k, fan_in, fan_out):
        bound = 1.0 / jnp.sqrt(fan_in)
        return jax.random.uniform(k, (1, fan_out), jnp.float32, -bound, bound)

    return {
        "gamma": jnp.ones((1, state_size), jnp.float32),
        "beta": jnp.zeros((1, state_size), jnp.float32),
        "w1": kaiming_normal(k1, state_size, fc1),
        "b1": linear_bias(kb1, state_size, fc1),
        "w2": kaiming_normal(k2, fc1, fc2),
        "b2": linear_bias(kb2, fc1, fc2),
        "w3": jax.random.uniform(k3, (fc2, action_size), jnp.float32, -0.003, 0.003),
        "b3": linear_bias(kb3, fc2, action_size),
    }


def actor_reference(state, params):
    """Pure-JAX f32 reference for correctness checking."""
    x = state.astype(jnp.float32)
    mean = jnp.mean(x, axis=0, keepdims=True)
    var = jnp.mean((x - mean) ** 2, axis=0, keepdims=True)
    xn = (x - mean) / jnp.sqrt(var + BN_EPS)
    xn = xn * params["gamma"] + params["beta"]
    h1 = jax.nn.relu(xn @ params["w1"] + params["b1"])
    h2 = jax.nn.relu(h1 @ params["w2"] + params["b2"])
    return jnp.tanh(h2 @ params["w3"] + params["b3"])


# --------------------------------------------------------------------------
if __name__ == "__main__":
    batch = 8
    state_size = 16
    action_size = 4
    fc1, fc2 = 256, 128

    key = jax.random.PRNGKey(0)
    k_state, k_params, k_big = jax.random.split(key, 3)
    params = init_actor_params(k_params, state_size, action_size, fc1, fc2)

    # Small batch -> single fused kernel path.
    state = jax.random.normal(k_state, (batch, state_size), jnp.float32)
    out = jax.block_until_ready(actor_forward(state, params))
    ref = actor_reference(state, params)
    assert out.shape == (batch, action_size)
    assert jnp.allclose(out, ref, atol=1e-2), float(jnp.max(jnp.abs(out - ref)))

    # Larger batch (non-multiple of the tile) -> batch-tiled two-pass path.
    big_batch = 600
    state_big = jax.random.normal(k_big, (big_batch, state_size), jnp.float32)
    out_big = jax.block_until_ready(actor_forward(state_big, params, tile_b=256))
    ref_big = actor_reference(state_big, params)
    assert out_big.shape == (big_batch, action_size)
    assert jnp.allclose(out_big, ref_big, atol=1e-2), \
        float(jnp.max(jnp.abs(out_big - ref_big)))

    print("KERNEL_OK")
</pallas_src>

<mosaic_0001>
module attributes {stable_mosaic.version = 11 : i64} {
  func.func @_actor_fused_kernel(%arg0: memref<8x16xf32, #tpu.memory_space<vmem>>, %arg1: memref<16x256xbf16, #tpu.memory_space<vmem>>, %arg2: memref<1x256xf32, #tpu.memory_space<vmem>>, %arg3: memref<256x128xbf16, #tpu.memory_space<vmem>>, %arg4: memref<1x128xf32, #tpu.memory_space<vmem>>, %arg5: memref<128x128xbf16, #tpu.memory_space<vmem>>, %arg6: memref<1x128xf32, #tpu.memory_space<vmem>>, %arg7: memref<8x128xf32, #tpu.memory_space<vmem>>) attributes {dimension_semantics = [], scalar_prefetch = 0 : i64, scratch_operands = 0 : i64, tpu.core_type = #tpu.core_type<tc>} {
    %c0 = arith.constant 0 : index
    %c0_0 = arith.constant 0 : index
    %0 = vector.load %arg0[%c0, %c0_0] : memref<8x16xf32, #tpu.memory_space<vmem>>, vector<8x16xf32>
    %cst = arith.constant dense<0.000000e+00> : vector<16xf32>
    %1 = vector.multi_reduction <add>, %0, %cst [0] : vector<8x16xf32> to vector<16xf32>
    %2 = vector.shape_cast %1 : vector<16xf32> to vector<1x16xf32>
    %3 = arith.mulf %0, %0 : vector<8x16xf32>
    %cst_1 = arith.constant dense<0.000000e+00> : vector<16xf32>
    %4 = vector.multi_reduction <add>, %3, %cst_1 [0] : vector<8x16xf32> to vector<16xf32>
    %5 = vector.shape_cast %4 : vector<16xf32> to vector<1x16xf32>
    %cst_2 = arith.constant 1.250000e-01 : f32
    %6 = vector.broadcast %cst_2 : f32 to vector<1x16xf32>
    %7 = arith.mulf %2, %6 : vector<1x16xf32>
    %cst_3 = arith.constant 1.250000e-01 : f32
    %8 = vector.broadcast %cst_3 : f32 to vector<1x16xf32>
    %9 = arith.mulf %5, %8 : vector<1x16xf32>
    %10 = arith.mulf %7, %7 : vector<1x16xf32>
    %11 = arith.subf %9, %10 : vector<1x16xf32>
    %cst_4 = arith.constant 0.000000e+00 : f32
    %12 = vector.broadcast %cst_4 : f32 to vector<1x16xf32>
    %13 = arith.maximumf %11, %12 : vector<1x16xf32>
    %14 = vector.broadcast %7 : vector<1x16xf32> to vector<8x16xf32>
    %15 = arith.subf %0, %14 : vector<8x16xf32>
    %cst_5 = arith.constant 9.99999974E-6 : f32
    %16 = vector.broadcast %cst_5 : f32 to vector<1x16xf32>
    %17 = arith.addf %13, %16 : vector<1x16xf32>
    %18 = math.rsqrt %17 : vector<1x16xf32>
    %19 = vector.broadcast %18 : vector<1x16xf32> to vector<8x16xf32>
    %20 = arith.mulf %15, %19 : vector<8x16xf32>
    %21 = arith.truncf %20 : vector<8x16xf32> to vector<8x16xbf16>
    %c0_6 = arith.constant 0 : index
    %c0_7 = arith.constant 0 : index
    %22 = vector.load %arg1[%c0_6, %c0_7] : memref<16x256xbf16, #tpu.memory_space<vmem>>, vector<16x256xbf16>
    %cst_8 = arith.constant dense<0.000000e+00> : vector<8x256xf32>
    %23 = tpu.matmul %21, %22, %cst_8 {dimension_numbers = #tpu.dot_dimension_numbers<[1], [0], [0], [1], [0, 0, 1, 1], [], []>} : vector<8x16xbf16>, vector<16x256xbf16>, vector<8x256xf32> -> vector<8x256xf32>
    %c0_9 = arith.constant 0 : index
    %c0_10 = arith.constant 0 : index
    %24 = vector.load %arg2[%c0_9, %c0_10] : memref<1x256xf32, #tpu.memory_space<vmem>>, vector<1x256xf32>
    %25 = vector.broadcast %24 : vector<1x256xf32> to vector<8x256xf32>
    %26 = arith.addf %23, %25 : vector<8x256xf32>
    %cst_11 = arith.constant 0.000000e+00 : f32
    %27 = vector.broadcast %cst_11 : f32 to vector<8x256xf32>
    %28 = arith.maximumf %26, %27 : vector<8x256xf32>
    %29 = arith.truncf %28 : vector<8x256xf32> to vector<8x256xbf16>
    %c0_12 = arith.constant 0 : index
    %c0_13 = arith.constant 0 : index
    %30 = vector.load %arg3[%c0_12, %c0_13] : memref<256x128xbf16, #tpu.memory_space<vmem>>, vector<256x128xbf16>
    %cst_14 = arith.constant dense<0.000000e+00> : vector<8x128xf32>
    %31 = tpu.matmul %29, %30, %cst_14 {dimension_numbers = #tpu.dot_dimension_numbers<[1], [0], [0], [1], [0, 0, 1, 1], [], []>} : vector<8x256xbf16>, vector<256x128xbf16>, vector<8x128xf32> -> vector<8x128xf32>
    %c0_15 = arith.constant 0 : index
    %c0_16 = arith.constant 0 : index
    %32 = vector.load %arg4[%c0_15, %c0_16] : memref<1x128xf32, #tpu.memory_space<vmem>>, vector<1x128xf32>
    %33 = vector.broadcast %32 : vector<1x128xf32> to vector<8x128xf32>
    %34 = arith.addf %31, %33 : vector<8x128xf32>
    %cst_17 = arith.constant 0.000000e+00 : f32
    %35 = vector.broadcast %cst_17 : f32 to vector<8x128xf32>
    %36 = arith.maximumf %34, %35 : vector<8x128xf32>
    %37 = arith.truncf %36 : vector<8x128xf32> to vector<8x128xbf16>
    %c0_18 = arith.constant 0 : index
    %c0_19 = arith.constant 0 : index
    %38 = vector.load %arg5[%c0_18, %c0_19] : memref<128x128xbf16, #tpu.memory_space<vmem>>, vector<128x128xbf16>
    %cst_20 = arith.constant dense<0.000000e+00> : vector<8x128xf32>
    %39 = tpu.matmul %37, %38, %cst_20 {dimension_numbers = #tpu.dot_dimension_numbers<[1], [0], [0], [1], [0, 0, 1, 1], [], []>} : vector<8x128xbf16>, vector<128x128xbf16>, vector<8x128xf32> -> vector<8x128xf32>
    %c0_21 = arith.constant 0 : index
    %c0_22 = arith.constant 0 : index
    %40 = vector.load %arg6[%c0_21, %c0_22] : memref<1x128xf32, #tpu.memory_space<vmem>>, vector<1x128xf32>
    %41 = vector.broadcast %40 : vector<1x128xf32> to vector<8x128xf32>
    %42 = arith.addf %39, %41 : vector<8x128xf32>
    %43 = math.tanh %42 : vector<8x128xf32>
    %c0_23 = arith.constant 0 : index
    %c0_24 = arith.constant 0 : index
    %44 = vector.load %arg7[%c0_23, %c0_24] : memref<8x128xf32, #tpu.memory_space<vmem>>, vector<8x128xf32>
    tpu.vector_store %arg7[%c0_23, %c0_24], %43 {strides = array<i32>} : memref<8x128xf32, #tpu.memory_space<vmem>>, vector<8x128xf32>,
    return
  }
}

</mosaic_0001>

<bundles_post_ra>
// kernel: tpu_custom_call.1
= control target key start
LH: loop header
LB: loop body
LE: loop exit
PB: predicated region body
PF: predicated region fallthrough
CT: control target
= control target key end

     0   :  { %12 = vsyncpa [#allocation3], 0  ;;  %s829_s0 = inlined_call_operand.hbm [shape: f32[8,16], index: 0, kind: input, shape index: {}]   ;;  %s830_s1 = inlined_call_operand.hbm [shape: bf16[16,256], index: 1, kind: input, shape index: {}]   ;;  %s831_s2 = inlined_call_operand.hbm [shape: f32[1,256], index: 2, kind: input, shape index: {}]   ;;  %s832_s3 = inlined_call_operand.hbm [shape: bf16[256,128], index: 3, kind: input, shape index: {}]   ;;  %s833_s4 = inlined_call_operand.vmem [shape: f32[1,128], index: 4, kind: input, shape index: {}]   ;;  %s834_s5 = inlined_call_operand.hbm [shape: bf16[128,128], index: 5, kind: input, shape index: {}]   ;;  %s835_s6 = inlined_call_operand.vmem [shape: f32[1,128], index: 6, kind: input, shape index: {}]   ;;  %s836_s7 = inlined_call_operand.hbm [shape: f32[8,128], index: 7, kind: output, shape index: {}]  }
   0x1   :  { %13 = vsyncpa [#allocation6], 0 }
   0x2   :  { %14 = vsyncpa [#allocation9], 0  ;;  %s31_s26 = sshll.u32 %s830_s1, 4  ;;  %s32_s26 = int_to_ptr.hbm [resolvable:$true] %s31_s26 }
   0x3   :  { %15 = vsyncpa [#allocation4], 0  ;;  %s751_s27 = smov [#allocation5]   ;;  %s55_s8 = sshll.u32 %s832_s3, 4  ;;  %s56_s8 = int_to_ptr.hbm [resolvable:$true] %s55_s8 }
   0x4   :  { %s33_s28 = sshll.u32 %s751_s27, 4  ;;  %s752_s9 = smov 128   ;;  %s34_s28 = int_to_ptr.vmem [resolvable:$true] %s33_s28 }
   0x5   :  { %s753_s10 = smov 8   ;;  %s754_s11 = smov [#allocation8]  }
   0x6   :  { %39 = dma.hbm_to_vmem [thread:$0]  %s32_s26, 256, %s34_s28, [#allocation6], %s752_s9, %s752_s9, %s753_s10  }
   0x7   :  { %s57_s12 = sshll.u32 %s754_s11, 4  ;;  %s755_s13 = smov 64   ;;  %s58_s12 = int_to_ptr.vmem [resolvable:$true] %s57_s12 }
   0x8   :  { %s756_s14 = smov 4   ;;  %s21_s16 = sshll.u32 %s829_s0, 4  ;;  %s22_s16 = int_to_ptr.hbm [resolvable:$true] %s21_s16 }
   0x9   :  { %63 = dma.hbm_to_vmem [thread:$0]  %s56_s8, 2048, %s58_s12, [#allocation9], %s755_s13, %s755_s13, %s756_s14  }
   0xa   :  { %s757_s17 = smov [#allocation2]   ;;  %s45_s20 = sshll.u32 %s831_s2, 4  ;;  %s46_s20 = int_to_ptr.hbm [resolvable:$true] %s45_s20 }
   0xb   :  { %s23_s18 = sshll.u32 %s757_s17, 4  ;;  %s758_s21 = smov [#allocation7]   ;;  %s24_s18 = int_to_ptr.vmem [resolvable:$true] %s23_s18 }
   0xc   :  { %26 = dma.hbm_to_vmem [thread:$0]  %s22_s16, 128, %s24_s18, [#allocation3]  }
   0xd   :  { %s47_s22 = sshll.u32 %s758_s21, 4  ;;  %s70_s25 = sshll.u32 %s834_s5, 4  ;;  %s48_s22 = int_to_ptr.vmem [resolvable:$true] %s47_s22  ;;  %s71_s25 = int_to_ptr.hbm [resolvable:$true] %s70_s25 }
   0xe   :  { %50 = dma.hbm_to_vmem [thread:$0]  %s46_s20, 32, %s48_s22, [#allocation6]  }
   0xf   :  { %s759_s0 = smov [#allocation10]  }
  0x10   :  { %s72_s26 = sshll.u32 %s759_s0, 4  ;;  %s73_s26 = int_to_ptr.vmem [resolvable:$true] %s72_s26 }
  0x11   :  { %78 = dma.hbm_to_vmem [thread:$0]  %s71_s25, 1024, %s73_s26, [#allocation9], %s755_s13, %s755_s13, %s756_s14  }
  0x12   :  { %743 = dma.done.wait [#allocation3], 128  }
  0x13   :  { %744 = vsyncadd [#allocation3], 4294967168 }
  0x14   :  { %745 = dma.done.wait [#allocation6], 288  }
  0x15   :  { %746 = vsyncadd [#allocation6], 4294967008 }
  0x16   :  { %747 = dma.done.wait [#allocation9], 3072  }
  0x17   :  { %748 = vsyncadd [#allocation9], 4294964224  ;;  %vm103_vm0 = vcmask 130048   ;;  %v453_v0 = vld [vmem:[#allocation5] sm:$0xf]  ;;  %v102_v2 = vld [vmem:[#allocation2] sm:$0xff] }
  0x18   :  { %v558_v1 = vld [vmem:[#allocation5 + $0x4] sm:$0xf0]  ;;  %v104_v4 = vsel %vm103_vm0, %v102_v2, 0.0  ;;  %v111_v5 = vmul.f32 %v102_v2, %v102_v2  ;;  %v557_v20 = vld [vmem:[#allocation5 + $0x4] sm:$0xf]  ;;  %v564_v36 = vld [vmem:[#allocation8 + $0x28] sm:$0xff] }
  0x19   :  { %v454_v3 = vor.u32 %v558_v1, %v453_v0  ;;  %v105_v6 = vrot.slane %v104_v4, 4  ;;  %v455_v21 = vld [vmem:[#allocation5 + $0x8] sm:$0xf0]  ;;  %v565_v32 = vld [vmem:[#allocation8 + $0x30] sm:$0xff]  ;;  %v563_v40 = vld [vmem:[#allocation8 + $0x20] sm:$0xff]  ;;  %s760_s29 = smov [#allocation11]  }
  0x1a   :  { %v112_v7 = vsel %vm103_vm0, %v111_v5, 0.0  ;;  %v458_v22 = vor.u32 %v557_v20, %v455_v21  ;;  %v566_v29 = vld [vmem:[#allocation8 + $0x38] sm:$0xff]  ;;  %v573_v34 = vld [vmem:[#allocation8 + $0x70] sm:$0xff]  ;;  %v560_v46 = vld [vmem:[#allocation8 + $0x8] sm:$0xff]  ;;  %s437_s30 = sshll.u32 %s760_s29, 4  ;;  %s438_s30 = int_to_ptr.vmem [resolvable:$true] %s437_s30 }
  0x1b   :  { %166 = vmatpush.bf16.msra.mxu1 %v454_v3  ;;  %v106_v8 = vadd.f32 %v105_v6, %v104_v4  ;;  %v113_v9 = vrot.slane %v112_v7, 4  ;;  %v574_v31 = vld [vmem:[#allocation8 + $0x78] sm:$0xff]  ;;  %321 = vmatpush.bf16.msra.mxu2 %v566_v29  ;;  %v561_v45 = vld [vmem:[#allocation8 + $0x10] sm:$0xff]  ;;  %v572_v47 = vld [vmem:[#allocation8 + $0x68] sm:$0xff] }
  0x1c   :  { %334 = vmatpush.bf16.msra.mxu3 %v574_v31  ;;  %v562_v44 = vld [vmem:[#allocation8 + $0x18] sm:$0xff]  ;;  %v559_v48 = vld [vmem:[#allocation8] sm:$0xff]  ;;  %v569_v51 = vld [vmem:[#allocation8 + $0x50] sm:$0xff] }
  0x1d   :  { %v107_v10 = vrot.slane %v106_v8, 2  ;;  %v114_v11 = vadd.f32 %v113_v9, %v112_v7  ;;  %v571_v49 = vld [vmem:[#allocation8 + $0x60] sm:$0xff]  ;;  %v570_v50 = vld [vmem:[#allocation8 + $0x58] sm:$0xff]  ;;  %v568_v52 = vld [vmem:[#allocation8 + $0x48] sm:$0xff] }
  0x1e   :  { %v567_v53 = vld [vmem:[#allocation8 + $0x40] sm:$0xff]  ;;  %v582_v54 = vld [vmem:[#allocation10 + $0x38] sm:$0xff]  ;;  %v581_v56 = vld [vmem:[#allocation10 + $0x30] sm:$0xff] }
  0x1f   :  { %v108_v12 = vadd.f32 %v107_v10, %v106_v8  ;;  %v115_v13 = vrot.slane %v114_v11, 2  ;;  %179 = vmatpush.bf16.msrb.mxu1 %v458_v22  ;;  %322 = vmatpush.bf16.msra.mxu2 %v565_v32  ;;  %v140_v55 = vld [vmem:[#allocation7] sm:$0x3]  ;;  %v580_v5 = vld [vmem:[#allocation10 + $0x28] sm:$0xff]  ;;  %v579_v6 = vld [vmem:[#allocation10 + $0x20] sm:$0xff] }
  0x20   :  { %335 = vmatpush.bf16.msra.mxu3 %v573_v34  ;;  %417 = vmatpush.bf16.msra.mxu0 %v582_v54  ;;  %v142_v57 = vperm.slane %v140_v55, 0  ;;  %v143_v63 = vperm.slane %v140_v55, 1  ;;  %v578_v7 = vld [vmem:[#allocation10 + $0x18] sm:$0xff]  ;;  %v577_v8 = vld [vmem:[#allocation10 + $0x10] sm:$0xff]  ;;  %v576_v9 = vld [vmem:[#allocation10 + $0x8] sm:$0xff] }
  0x21   :  { %v109_v14 = vrot.slane %v108_v12, 1  ;;  %v116_v15 = vadd.f32 %v115_v13, %v114_v11  ;;  %v575_v10 = vld [vmem:[#allocation10] sm:$0xff] }
  0x22   :  { %v593_v13 = vld [vmem:[%s833_s4] ss:$0 sm:$0xff]  ;;  %s439_s4 = sshll.u32 %s836_s7, 4  ;;  %s440_s4 = int_to_ptr.hbm [resolvable:$true] %s439_s4 }
  0x23   :  { %v110_v16 = vadd.f32 %v109_v14, %v108_v12  ;;  %v117_v17 = vrot.slane %v116_v15, 1  ;;  %323 = vmatpush.bf16.msra.mxu2 %v564_v36  ;;  %v594_v20 = vld [vmem:[%s835_s6] ss:$0 sm:$0xff] }
  0x24   :  { %336 = vmatpush.bf16.msra.mxu3 %v572_v47  ;;  %418 = vmatpush.bf16.msra.mxu0 %v581_v56 }
  0x25   :  { %v118_v18 = vadd.f32 %v117_v17, %v116_v15  ;;  %v119_v19 = vmul.f32 0.125, %v110_v16 }
  0x27   :  { %v120_v23 = vmul.f32 0.125, %v118_v18  ;;  %v121_v24 = vmul.f32 %v119_v19, %v119_v19  ;;  %v124_v38 = vsub.f32 %v102_v2, %v119_v19  ;;  %324 = vmatpush.bf16.msra.mxu2 %v563_v40 }
  0x28   :  { %337 = vmatpush.bf16.msra.mxu3 %v571_v49  ;;  %419 = vmatpush.bf16.msra.mxu0 %v580_v5 }
  0x29   :  { %v122_v25 = vsub.f32 %v120_v23, %v121_v24 }
  0x2b   :  { %v123_v26 = vmax.f32 %v122_v25, 0.0  ;;  %325 = vmatpush.bf16.msra.mxu2 %v562_v44 }
  0x2c   :  { %338 = vmatpush.bf16.msra.mxu3 %v570_v50  ;;  %420 = vmatpush.bf16.msra.mxu0 %v579_v6 }
  0x2d   :  { %v125_v27 = vadd.f32 1e-05, %v123_v26 }
  0x2f   :  { %595 = vrsqrt.f32 %v125_v27  ;;  %vm132_vm1 = vweird.f32 %v125_v27  ;;  %326 = vmatpush.bf16.msra.mxu2 %v561_v45 }
  0x30   :  { %339 = vmatpush.bf16.msra.mxu3 %v569_v51  ;;  %421 = vmatpush.bf16.msra.mxu0 %v578_v7 }
  0x33   :  { %327 = vmatpush.bf16.msra.mxu2 %v560_v46 }
  0x34   :  { %340 = vmatpush.bf16.msra.mxu3 %v568_v52  ;;  %422 = vmatpush.bf16.msra.mxu0 %v577_v8 }
  0x35   :  { %v596_v28 = vpop.eup %595 }
  0x36   :  { %v127_v30 = vmul.f32 %v596_v28, %v125_v27  ;;  %vm133_vm2 = vweird.f32 %v596_v28 }
  0x37   :  { %vm134_vm3 = vmor %vm132_vm1, %vm133_vm2  ;;  %328 = vmatpush.bf16.msra.mxu2 %v559_v48 }
  0x38   :  { %v128_v33 = vmul.f32 %v596_v28, %v127_v30  ;;  %341 = vmatpush.bf16.msra.mxu3 %v567_v53  ;;  %423 = vmatpush.bf16.msra.mxu0 %v576_v9 }
  0x3a   :  { %v129_v35 = vmul.f32 0.5, %v128_v33 }
  0x3c   :  { %v130_v37 = vsub.f32 1.5, %v129_v35  ;;  %424 = vmatpush.bf16.msra.mxu0 %v575_v10 }
  0x3e   :  { %v131_v39 = vmul.f32 %v596_v28, %v130_v37 }
  0x40   :  { %v135_v41 = vsel %vm134_vm3, %v596_v28, %v131_v39 }
  0x41   :  { %v136_v42 = vmul.f32 %v135_v41, %v124_v38 }
  0x43   :  { %v137_v43 = vpack.c.bf16 %v136_v42, %v136_v42 }
  0x45   :  { %459 = vmatmul.msk.bf16.vlgmr.msra.gmra.mxu1 %vm103_vm0, %v137_v43 }
  0x55   :  { %460 = vmatmul.msk.bf16.vlgmr.msrb.gmra.mxu1 %vm103_vm0, %v137_v43 }
  0xc2   :  { %v168_v58 = vpop.f32.mrf.mxu1 }
  0xc3   :  { %v169_v59 = vadd.f32 %v168_v58, %v142_v57 }
  0xc5   :  { %v185_v60 = vmax.f32 %v169_v59, 0.0 }
  0xc7   :  { %v187_v61 = vpack.c.bf16 %v185_v60, %v185_v60 }
  0xc9   :  { %329 = vmatmul.bf16.vlgmr.msra.gmra.mxu2 %v187_v61 }
  0xca   :  { %v170_v62 = vpop.f32.mrf.mxu1 }
  0xd2   :  { %v181_v0 = vpop.f32.mrf.mxu1 }
  0xd3   :  { %v182_v1 = vadd.f32 %v181_v0, %v143_v63 }
  0xd5   :  { %v186_v2 = vmax.f32 %v182_v1, 0.0 }
  0xd7   :  { %v188_v3 = vpack.c.bf16 %v186_v2, %v186_v2 }
  0xd9   :  { %342 = vmatmul.bf16.vlgmr.msra.gmra.mxu3 %v188_v3 }
  0xda   :  { %v183_v4 = vpop.f32.mrf.mxu1 }
 0x14c   :  { %v330_v11 = vpop.f32.mrf.mxu2 }
 0x14d   :  { %v331_v14 = vadd.f32 %v593_v13, %v330_v11 }
 0x154   :  { %v332_v12 = vpop.f32.mrf.mxu2 }
 0x15c   :  { %v343_v15 = vpop.f32.mrf.mxu3 }
 0x15d   :  { %v344_v16 = vadd.f32 %v343_v15, %v331_v14 }
 0x15f   :  { %v347_v17 = vmax.f32 %v344_v16, 0.0 }
 0x161   :  { %v348_v18 = vpack.c.bf16 %v347_v17, %v347_v17 }
 0x163   :  { %425 = vmatmul.bf16.vlgmr.msra.gmra.mxu0 %v348_v18 }
 0x164   :  { %v345_v19 = vpop.f32.mrf.mxu3 }
 0x1e0   :  { %v426_v21 = vpop.f32.mrf.mxu0 }
 0x1e1   :  { %v427_v22 = vadd.f32 %v594_v20, %v426_v21 }
 0x1e3   :  { %597 = vtanh.f32 %v427_v22 }
 0x1e8   :  { %v428_v23 = vpop.f32.mrf.mxu0 }
 0x1e9   :  { %v598_v24 = vpop.eup %597 }
 0x1ea   :  { %431 = vst [vmem:[#allocation11] sm:$0xff] %v598_v24 }
 0x1eb   :  { %442 = dma.vmem_to_hbm [thread:$0]  %s438_s30, 128, %s440_s4, [#allocation4]  }
 0x1ec   :  { %749 = dma.done.wait [#allocation4], 128  }
 0x1ed   :  { %750 = vsyncadd [#allocation4], 4294967168 }
 0x1ee   :  { %447 = vsyncpa [#allocation3], 1 }
 0x1ef   :  { %448 = vsyncpa [#allocation6], 1 }
 0x1f0   :  { %449 = vsyncpa [#allocation9], 1 }
 0x1f1   :  { %450 = vsyncpa [#allocation4], 1 }

</bundles_post_ra>
